<compile_context>
chip_gen: v7x
topology: tpu7x:2x2x1
jax: 0.10.0
libtpu: 0.0.40
codegen_flags: <defaults>
</compile_context>

<pallas_src>
import functools

import jax
import jax.numpy as jnp
import numpy as np
from jax import lax
from jax.experimental import pallas as pl
from jax.experimental.pallas import tpu as pltpu

C = 4        # channels (Conv2d(4, 4, 3, padding=1)); 2*C == one 8-sublane tile
K = 3        # conv kernel size
EPS = 1e-5   # GroupNorm eps (PyTorch default)


def _round_up(n, m):
    return ((n + m - 1) // m) * m


def _model_kernel(x_ref, w_ref, bias_ref, gamma_ref, addc_ref, o_ref, stk_ref,
                  *, H, W):
    """Fused conv3x3 + GroupNorm(1, C) + embedding add + SiLU (whole batch).

    x_ref    : (BCP, HW)       VMEM  x.reshape(B*C, H*W), rows padded to mult. of 8
    w_ref    : (2C, 9*2C)      VMEM  block-diagonal per-tap conv weights
    bias_ref : (BCP, 1)        VMEM  conv bias per row (tiled per sample)
    gamma_ref: (BCP, 1)        VMEM  GroupNorm gamma per row
    addc_ref : (BCP, 1)        VMEM  beta + t_emb + y_emb per (sample, channel) row
    o_ref    : (BCP, HW)       VMEM  output, same packing as x_ref
    stk_ref  : (9*2C, HW)      VMEM  staging buffer for the stacked contraction
    """
    HW = H * W
    TWO_C = 2 * C
    BP = x_ref.shape[0] // TWO_C              # sample pairs (static, tiny)
    inv_n = 1.0 / float(C * H * W)

    # --- conv-tap validity masks (padding=1 "same" conv), built once from iota:
    #     no host-side mask array, no divisions (pow-2 fast path for % W).
    lane = lax.broadcasted_iota(jnp.int32, (1, HW), 1)
    if (W & (W - 1)) == 0:
        wpos = lane & (W - 1)
    else:
        wpos = lane % W
    col_ok = (wpos >= 1, None, wpos <= W - 2)              # dw = -1, 0, +1
    row_ok = (lane >= W, None, lane < (H - 1) * W)         # dh = -1, 0, +1

    row_ids = lax.broadcasted_iota(jnp.int32, (TWO_C, 1), 0)
    upper = row_ids < C                                    # rows 0..C-1 = 1st sample
    upper_f = upper.astype(jnp.float32)

    w_big = w_ref[...]                                     # (2C, 9*2C)

    for p in range(BP):                                    # static & tiny (1 at B=2)
        r0 = p * TWO_C
        xs = x_ref[r0:r0 + TWO_C, :]                       # (8, HW) two samples

        # 9 lane-rolled (XLU), boundary-masked views stacked on the K axis.
        # Rolls never mix the two samples (sublanes untouched); any wrap-around
        # lane lands on a position that the boundary mask zeroes anyway.
        for t in range(K * K):
            kh, kw = divmod(t, K)
            off = (kh - 1) * W + (kw - 1)                  # view[l] = x[l + off]
            v = xs if off == 0 else pltpu.roll(xs, (-off) % HW, 1)
            m = row_ok[kh]
            if col_ok[kw] is not None:
                m = col_ok[kw] if m is None else jnp.logical_and(m, col_ok[kw])
            if m is not None:
                v = jnp.where(m, v, 0.0)
            stk_ref[t * TWO_C:(t + 1) * TWO_C, :] = v

        # One K = 9*2C MXU contraction (block-diagonal weights keep the two
        # samples of the tile independent).  Default f32 precision: validated
        # against the 1e-4 self-test budget; MXU cost is negligible at M = 8.
        acc = jnp.dot(w_big, stk_ref[...],
                      preferred_element_type=jnp.float32)   # (2C, HW)
        acc = acc + bias_ref[r0:r0 + TWO_C, :]

        # GroupNorm(1, C) per sample half: fused single-pass sum / sum-of-squares.
        # (E[x^2] - mean^2 is fine at these activation scales; switch to the
        #  two-pass form only if activation magnitudes grow by orders of magnitude.)
        colsum = jnp.sum(acc, axis=1, keepdims=True)        # (2C, 1)
        colsq = jnp.sum(acc * acc, axis=1, keepdims=True)   # (2C, 1)
        s_all = jnp.sum(colsum)
        q_all = jnp.sum(colsq)
        s0 = jnp.sum(colsum * upper_f)
        q0 = jnp.sum(colsq * upper_f)
        m0 = s0 * inv_n
        m1 = (s_all - s0) * inv_n
        v0 = q0 * inv_n - m0 * m0                           # biased var (PyTorch)
        v1 = (q_all - q0) * inv_n - m1 * m1
        mean_vec = jnp.where(upper, m0, m1)                 # (2C, 1)
        inv_vec = jnp.where(upper, lax.rsqrt(v0 + EPS), lax.rsqrt(v1 + EPS))

        scale = inv_vec * gamma_ref[r0:r0 + TWO_C, :]
        yv = (acc - mean_vec) * scale + addc_ref[r0:r0 + TWO_C, :]
        o_ref[r0:r0 + TWO_C, :] = (yv * jax.nn.sigmoid(yv)).astype(o_ref.dtype)
        # full-width, lane-aligned store (HW is a multiple of 128 here)


@jax.jit
def simple_mock_model_forward(x, t, y, params):
    """Pallas forward matching SimpleMockModel.forward (x: NCHW float32).

    (The module's `h` / `train` arguments are unused by its forward and omitted.)
    """
    B, Cin, H, W = x.shape
    assert Cin == C
    HW = H * W
    BC = B * C
    BCP = _round_up(BC, 2 * C)               # whole 8-sublane sample-pairs
    f32 = jnp.float32

    # ---- tiny parameter / embedding glue (O(B*C)-sized, stays in XLA) ----
    t_emb = t.astype(f32)[:, None] * params["time_w"][None, :, 0] \
        + params["time_b"][None, :]                                    # (B, C)
    y_emb = params["class_emb"][y.astype(jnp.int32)]                   # (B, C)
    addc = (params["beta"][None, :] + t_emb + y_emb).reshape(BC, 1)    # GN beta folded
    bias = jnp.tile(params["conv_b"].astype(f32), B).reshape(BC, 1)
    gamma = jnp.tile(params["gamma"].astype(f32), B).reshape(BC, 1)

    # block-diagonal per-tap weights: w_big[co_row, tap*2C + ci_row]
    wt = jnp.transpose(params["conv_w"].astype(f32), (2, 3, 0, 1)).reshape(K * K, C, C)
    w_blk = jnp.einsum("tij,ab->taibj", wt, jnp.eye(2, dtype=f32))
    w_blk = w_blk.reshape(K * K, 2 * C, 2 * C)
    w_big = jnp.transpose(w_blk, (1, 0, 2)).reshape(2 * C, K * K * 2 * C)

    # ---- the ONLY x-sized wrapper op: a free contiguous reshape ----
    x2d = x.astype(f32).reshape(BC, HW)
    if BCP != BC:   # odd batch: pad to whole pairs; dead rows produce zeros, dropped
        x2d = jnp.pad(x2d, ((0, BCP - BC), (0, 0)))
        addc = jnp.pad(addc, ((0, BCP - BC), (0, 0)))
        bias = jnp.pad(bias, ((0, BCP - BC), (0, 0)))
        gamma = jnp.pad(gamma, ((0, BCP - BC), (0, 0)))

    vmem = pl.BlockSpec(memory_space=pltpu.MemorySpace.VMEM)
    cost = pl.CostEstimate(
        flops=2 * BC * C * K * K * HW + 12 * BC * HW,
        transcendentals=BC * HW,
        bytes_accessed=4 * (2 * BCP * HW + 3 * BCP + (2 * C) * (K * K * 2 * C)))

    # One gridless call: ~100 KiB of VMEM (incl. the (72, HW) staging scratch),
    # far under the scoped limit on every generation (v7x: 64 MiB phys /
    # 32 MiB default scoped).  If B or H*W grows much larger, re-tile with a
    # grid over sample-pairs / row strips and
    # compiler_params=pltpu.CompilerParams(dimension_semantics=("parallel", ...))
    # so both v7x TensorCores get used.
    out = pl.pallas_call(
        functools.partial(_model_kernel, H=H, W=W),
        out_shape=jax.ShapeDtypeStruct((BCP, HW), f32),
        in_specs=[vmem] * 5,
        out_specs=vmem,
        scratch_shapes=[pltpu.VMEM((K * K * 2 * C, HW), jnp.float32)],
        cost_estimate=cost,
    )(x2d, w_big, bias, gamma, addc)

    # unpack: a free reshape back to NCHW
    return out[:BC].reshape(B, C, H, W)


def _reference_forward(x, t, y, params):
    """Pure-JAX reference (mirrors the PyTorch module exactly)."""
    t_emb = t.astype(jnp.float32)[:, None] * params["time_w"][None, :, 0] \
        + params["time_b"][None, :]
    y_emb = params["class_emb"][y.astype(jnp.int32)]
    xc = lax.conv_general_dilated(
        x, params["conv_w"], window_strides=(1, 1), padding="SAME",
        dimension_numbers=("NCHW", "OIHW", "NCHW"))
    xc = xc + params["conv_b"][None, :, None, None]
    mean = jnp.mean(xc, axis=(1, 2, 3), keepdims=True)
    var = jnp.mean(jnp.square(xc - mean), axis=(1, 2, 3), keepdims=True)
    xn = (xc - mean) * lax.rsqrt(var + EPS)
    xn = xn * params["gamma"][None, :, None, None] + params["beta"][None, :, None, None]
    xn = xn + t_emb[:, :, None, None] + y_emb[:, :, None, None]
    return xn * jax.nn.sigmoid(xn)


def init_params(key, num_classes):
    ks = jax.random.split(key, 6)
    return {
        "conv_w": 0.1 * jax.random.normal(ks[0], (C, C, K, K), jnp.float32),
        "conv_b": 0.1 * jax.random.normal(ks[1], (C,), jnp.float32),
        "gamma": jnp.ones((C,), jnp.float32)
        + 0.05 * jax.random.normal(ks[2], (C,), jnp.float32),
        "beta": 0.05 * jax.random.normal(ks[3], (C,), jnp.float32),
        "time_w": 0.1 * jax.random.normal(ks[4], (C, 1), jnp.float32),   # Linear(1, 4)
        "time_b": jnp.zeros((C,), jnp.float32),
        "class_emb": 0.1 * jax.random.normal(ks[5], (num_classes + 1, C), jnp.float32),
    }


if __name__ == "__main__":
    key = jax.random.PRNGKey(0)
    k_p, k_x, k_t, k_y = jax.random.split(key, 4)

    B, H, W = 2, 16, 16
    num_classes = 10

    params = init_params(k_p, num_classes)
    x = jax.random.normal(k_x, (B, C, H, W), jnp.float32)
    t = jax.random.uniform(k_t, (B,), jnp.float32)
    y = jax.random.randint(k_y, (B,), 0, num_classes + 1, jnp.int32)

    out = simple_mock_model_forward(x, t, y, params)
    out = jax.block_until_ready(out)

    ref = jax.block_until_ready(_reference_forward(x, t, y, params))
    np.testing.assert_allclose(np.asarray(out), np.asarray(ref), atol=1e-4, rtol=1e-4)

    print("KERNEL_OK")
</pallas_src>

<mosaic_0001>
module attributes {stable_mosaic.version = 11 : i64} {
  func.func @_model_kernel(%arg0: memref<8x256xf32, #tpu.memory_space<vmem>>, %arg1: memref<8x72xf32, #tpu.memory_space<vmem>>, %arg2: memref<8x1xf32, #tpu.memory_space<vmem>>, %arg3: memref<8x1xf32, #tpu.memory_space<vmem>>, %arg4: memref<8x1xf32, #tpu.memory_space<vmem>>, %arg5: memref<8x256xf32, #tpu.memory_space<vmem>>, %arg6: memref<72x256xf32, #tpu.memory_space<vmem>>) attributes {dimension_semantics = [], scalar_prefetch = 0 : i64, scratch_operands = 1 : i64, tpu.core_type = #tpu.core_type<tc>} {
    %0 = tpu.iota {dimensions = array<i32: 1>} : vector<1x256xi32>
    %c15_i32 = arith.constant 15 : i32
    %1 = vector.broadcast %c15_i32 : i32 to vector<1x256xi32>
    %2 = arith.andi %0, %1 : vector<1x256xi32>
    %c1_i32 = arith.constant 1 : i32
    %3 = vector.broadcast %c1_i32 : i32 to vector<1x256xi32>
    %4 = arith.cmpi sge, %2, %3 : vector<1x256xi32>
    %c14_i32 = arith.constant 14 : i32
    %5 = vector.broadcast %c14_i32 : i32 to vector<1x256xi32>
    %6 = arith.cmpi sle, %2, %5 : vector<1x256xi32>
    %c16_i32 = arith.constant 16 : i32
    %7 = vector.broadcast %c16_i32 : i32 to vector<1x256xi32>
    %8 = arith.cmpi sge, %0, %7 : vector<1x256xi32>
    %c240_i32 = arith.constant 240 : i32
    %9 = vector.broadcast %c240_i32 : i32 to vector<1x256xi32>
    %10 = arith.cmpi slt, %0, %9 : vector<1x256xi32>
    %11 = tpu.iota {dimensions = array<i32: 0>} : vector<8x1xi32>
    %c4_i32 = arith.constant 4 : i32
    %12 = vector.broadcast %c4_i32 : i32 to vector<8x1xi32>
    %13 = arith.cmpi slt, %11, %12 : vector<8x1xi32>
    %14 = arith.extui %13 : vector<8x1xi1> to vector<8x1xi32>
    %15 = arith.sitofp %14 : vector<8x1xi32> to vector<8x1xf32>
    %c0 = arith.constant 0 : index
    %c0_0 = arith.constant 0 : index
    %16 = vector.load %arg1[%c0, %c0_0] : memref<8x72xf32, #tpu.memory_space<vmem>>, vector<8x72xf32>
    %c0_1 = arith.constant 0 : index
    %c0_2 = arith.constant 0 : index
    %17 = vector.load %arg0[%c0_1, %c0_2] : memref<8x256xf32, #tpu.memory_space<vmem>>, vector<8x256xf32>
    %c17_i32 = arith.constant 17 : i32
    %18 = tpu.dynamic_rotate %17 by %c17_i32 dim 1 : vector<8x256xf32>, i32 -> vector<8x256xf32>
    %19 = arith.andi %8, %4 : vector<1x256xi1>
    %cst = arith.constant 0.000000e+00 : f32
    %20 = vector.shape_cast %19 : vector<1x256xi1> to vector<1x256xi1>
    %21 = vector.broadcast %20 : vector<1x256xi1> to vector<8x256xi1>
    %22 = vector.broadcast %cst : f32 to vector<8x256xf32>
    %23 = arith.select %21, %18, %22 : vector<8x256xi1>, vector<8x256xf32>
    %c0_3 = arith.constant 0 : index
    %c0_4 = arith.constant 0 : index
    %24 = vector.load %arg6[%c0_3, %c0_4] : memref<72x256xf32, #tpu.memory_space<vmem>>, vector<8x256xf32>
    tpu.vector_store %arg6[%c0_3, %c0_4], %23 {strides = array<i32>} : memref<72x256xf32, #tpu.memory_space<vmem>>, vector<8x256xf32>,
    %c16_i32_5 = arith.constant 16 : i32
    %25 = tpu.dynamic_rotate %17 by %c16_i32_5 dim 1 : vector<8x256xf32>, i32 -> vector<8x256xf32>
    %cst_6 = arith.constant 0.000000e+00 : f32
    %26 = vector.shape_cast %8 : vector<1x256xi1> to vector<1x256xi1>
    %27 = vector.broadcast %26 : vector<1x256xi1> to vector<8x256xi1>
    %28 = vector.broadcast %cst_6 : f32 to vector<8x256xf32>
    %29 = arith.select %27, %25, %28 : vector<8x256xi1>, vector<8x256xf32>
    %c8 = arith.constant 8 : index
    %c0_7 = arith.constant 0 : index
    %30 = vector.load %arg6[%c8, %c0_7] : memref<72x256xf32, #tpu.memory_space<vmem>>, vector<8x256xf32>
    tpu.vector_store %arg6[%c8, %c0_7], %29 {strides = array<i32>} : memref<72x256xf32, #tpu.memory_space<vmem>>, vector<8x256xf32>,
    %c15_i32_8 = arith.constant 15 : i32
    %31 = tpu.dynamic_rotate %17 by %c15_i32_8 dim 1 : vector<8x256xf32>, i32 -> vector<8x256xf32>
    %32 = arith.andi %8, %6 : vector<1x256xi1>
    %cst_9 = arith.constant 0.000000e+00 : f32
    %33 = vector.shape_cast %32 : vector<1x256xi1> to vector<1x256xi1>
    %34 = vector.broadcast %33 : vector<1x256xi1> to vector<8x256xi1>
    %35 = vector.broadcast %cst_9 : f32 to vector<8x256xf32>
    %36 = arith.select %34, %31, %35 : vector<8x256xi1>, vector<8x256xf32>
    %c16 = arith.constant 16 : index
    %c0_10 = arith.constant 0 : index
    %37 = vector.load %arg6[%c16, %c0_10] : memref<72x256xf32, #tpu.memory_space<vmem>>, vector<8x256xf32>
    tpu.vector_store %arg6[%c16, %c0_10], %36 {strides = array<i32>} : memref<72x256xf32, #tpu.memory_space<vmem>>, vector<8x256xf32>,
    %c1_i32_11 = arith.constant 1 : i32
    %38 = tpu.dynamic_rotate %17 by %c1_i32_11 dim 1 : vector<8x256xf32>, i32 -> vector<8x256xf32>
    %cst_12 = arith.constant 0.000000e+00 : f32
    %39 = vector.shape_cast %4 : vector<1x256xi1> to vector<1x256xi1>
    %40 = vector.broadcast %39 : vector<1x256xi1> to vector<8x256xi1>
    %41 = vector.broadcast %cst_12 : f32 to vector<8x256xf32>
    %42 = arith.select %40, %38, %41 : vector<8x256xi1>, vector<8x256xf32>
    %c24 = arith.constant 24 : index
    %c0_13 = arith.constant 0 : index
    %43 = vector.load %arg6[%c24, %c0_13] : memref<72x256xf32, #tpu.memory_space<vmem>>, vector<8x256xf32>
    tpu.vector_store %arg6[%c24, %c0_13], %42 {strides = array<i32>} : memref<72x256xf32, #tpu.memory_space<vmem>>, vector<8x256xf32>,
    %c32 = arith.constant 32 : index
    %c0_14 = arith.constant 0 : index
    %44 = vector.load %arg6[%c32, %c0_14] : memref<72x256xf32, #tpu.memory_space<vmem>>, vector<8x256xf32>
    tpu.vector_store %arg6[%c32, %c0_14], %17 {strides = array<i32>} : memref<72x256xf32, #tpu.memory_space<vmem>>, vector<8x256xf32>,
    %c255_i32 = arith.constant 255 : i32
    %45 = tpu.dynamic_rotate %17 by %c255_i32 dim 1 : vector<8x256xf32>, i32 -> vector<8x256xf32>
    %cst_15 = arith.constant 0.000000e+00 : f32
    %46 = vector.shape_cast %6 : vector<1x256xi1> to vector<1x256xi1>
    %47 = vector.broadcast %46 : vector<1x256xi1> to vector<8x256xi1>
    %48 = vector.broadcast %cst_15 : f32 to vector<8x256xf32>
    %49 = arith.select %47, %45, %48 : vector<8x256xi1>, vector<8x256xf32>
    %c40 = arith.constant 40 : index
    %c0_16 = arith.constant 0 : index
    %50 = vector.load %arg6[%c40, %c0_16] : memref<72x256xf32, #tpu.memory_space<vmem>>, vector<8x256xf32>
    tpu.vector_store %arg6[%c40, %c0_16], %49 {strides = array<i32>} : memref<72x256xf32, #tpu.memory_space<vmem>>, vector<8x256xf32>,
    %c241_i32 = arith.constant 241 : i32
    %51 = tpu.dynamic_rotate %17 by %c241_i32 dim 1 : vector<8x256xf32>, i32 -> vector<8x256xf32>
    %52 = arith.andi %10, %4 : vector<1x256xi1>
    %cst_17 = arith.constant 0.000000e+00 : f32
    %53 = vector.shape_cast %52 : vector<1x256xi1> to vector<1x256xi1>
    %54 = vector.broadcast %53 : vector<1x256xi1> to vector<8x256xi1>
    %55 = vector.broadcast %cst_17 : f32 to vector<8x256xf32>
    %56 = arith.select %54, %51, %55 : vector<8x256xi1>, vector<8x256xf32>
    %c48 = arith.constant 48 : index
    %c0_18 = arith.constant 0 : index
    %57 = vector.load %arg6[%c48, %c0_18] : memref<72x256xf32, #tpu.memory_space<vmem>>, vector<8x256xf32>
    tpu.vector_store %arg6[%c48, %c0_18], %56 {strides = array<i32>} : memref<72x256xf32, #tpu.memory_space<vmem>>, vector<8x256xf32>,
    %c240_i32_19 = arith.constant 240 : i32
    %58 = tpu.dynamic_rotate %17 by %c240_i32_19 dim 1 : vector<8x256xf32>, i32 -> vector<8x256xf32>
    %cst_20 = arith.constant 0.000000e+00 : f32
    %59 = vector.shape_cast %10 : vector<1x256xi1> to vector<1x256xi1>
    %60 = vector.broadcast %59 : vector<1x256xi1> to vector<8x256xi1>
    %61 = vector.broadcast %cst_20 : f32 to vector<8x256xf32>
    %62 = arith.select %60, %58, %61 : vector<8x256xi1>, vector<8x256xf32>
    %c56 = arith.constant 56 : index
    %c0_21 = arith.constant 0 : index
    %63 = vector.load %arg6[%c56, %c0_21] : memref<72x256xf32, #tpu.memory_space<vmem>>, vector<8x256xf32>
    tpu.vector_store %arg6[%c56, %c0_21], %62 {strides = array<i32>} : memref<72x256xf32, #tpu.memory_space<vmem>>, vector<8x256xf32>,
    %c239_i32 = arith.constant 239 : i32
    %64 = tpu.dynamic_rotate %17 by %c239_i32 dim 1 : vector<8x256xf32>, i32 -> vector<8x256xf32>
    %65 = arith.andi %10, %6 : vector<1x256xi1>
    %cst_22 = arith.constant 0.000000e+00 : f32
    %66 = vector.shape_cast %65 : vector<1x256xi1> to vector<1x256xi1>
    %67 = vector.broadcast %66 : vector<1x256xi1> to vector<8x256xi1>
    %68 = vector.broadcast %cst_22 : f32 to vector<8x256xf32>
    %69 = arith.select %67, %64, %68 : vector<8x256xi1>, vector<8x256xf32>
    %c64 = arith.constant 64 : index
    %c0_23 = arith.constant 0 : index
    %70 = vector.load %arg6[%c64, %c0_23] : memref<72x256xf32, #tpu.memory_space<vmem>>, vector<8x256xf32>
    tpu.vector_store %arg6[%c64, %c0_23], %69 {strides = array<i32>} : memref<72x256xf32, #tpu.memory_space<vmem>>, vector<8x256xf32>,
    %c0_24 = arith.constant 0 : index
    %c0_25 = arith.constant 0 : index
    %71 = vector.load %arg6[%c0_24, %c0_25] : memref<72x256xf32, #tpu.memory_space<vmem>>, vector<72x256xf32>
    %cst_26 = arith.constant dense<0.000000e+00> : vector<8x256xf32>
    %72 = tpu.matmul %16, %71, %cst_26 {dimension_numbers = #tpu.dot_dimension_numbers<[1], [0], [0], [1], [0, 0, 1, 1], [], []>} : vector<8x72xf32>, vector<72x256xf32>, vector<8x256xf32> -> vector<8x256xf32>
    %c0_27 = arith.constant 0 : index
    %c0_28 = arith.constant 0 : index
    %73 = vector.load %arg2[%c0_27, %c0_28] : memref<8x1xf32, #tpu.memory_space<vmem>>, vector<8x1xf32>
    %74 = vector.broadcast %73 : vector<8x1xf32> to vector<8x256xf32>
    %75 = arith.addf %72, %74 : vector<8x256xf32>
    %cst_29 = arith.constant dense<0.000000e+00> : vector<8xf32>
    %76 = vector.multi_reduction <add>, %75, %cst_29 [1] : vector<8x256xf32> to vector<8xf32>
    %77 = vector.shape_cast %76 : vector<8xf32> to vector<8x1xf32>
    %78 = arith.mulf %75, %75 : vector<8x256xf32>
    %cst_30 = arith.constant dense<0.000000e+00> : vector<8xf32>
    %79 = vector.multi_reduction <add>, %78, %cst_30 [1] : vector<8x256xf32> to vector<8xf32>
    %80 = vector.shape_cast %79 : vector<8xf32> to vector<8x1xf32>
    %81 = vector.shape_cast %77 : vector<8x1xf32> to vector<1x8x1xf32>
    %cst_31 = arith.constant dense<0.000000e+00> : vector<1xf32>
    %82 = vector.multi_reduction <add>, %81, %cst_31 [1, 2] : vector<1x8x1xf32> to vector<1xf32>
    %83 = vector.shape_cast %82 : vector<1xf32> to vector<1x1x1xf32>
    %84 = vector.extract %83[0, 0, 0] : f32 from vector<1x1x1xf32>
    %85 = vector.shape_cast %80 : vector<8x1xf32> to vector<1x8x1xf32>
    %cst_32 = arith.constant dense<0.000000e+00> : vector<1xf32>
    %86 = vector.multi_reduction <add>, %85, %cst_32 [1, 2] : vector<1x8x1xf32> to vector<1xf32>
    %87 = vector.shape_cast %86 : vector<1xf32> to vector<1x1x1xf32>
    %88 = vector.extract %87[0, 0, 0] : f32 from vector<1x1x1xf32>
    %89 = arith.mulf %77, %15 : vector<8x1xf32>
    %90 = vector.shape_cast %89 : vector<8x1xf32> to vector<1x8x1xf32>
    %cst_33 = arith.constant dense<0.000000e+00> : vector<1xf32>
    %91 = vector.multi_reduction <add>, %90, %cst_33 [1, 2] : vector<1x8x1xf32> to vector<1xf32>
    %92 = vector.shape_cast %91 : vector<1xf32> to vector<1x1x1xf32>
    %93 = vector.extract %92[0, 0, 0] : f32 from vector<1x1x1xf32>
    %94 = arith.mulf %80, %15 : vector<8x1xf32>
    %95 = vector.shape_cast %94 : vector<8x1xf32> to vector<1x8x1xf32>
    %cst_34 = arith.constant dense<0.000000e+00> : vector<1xf32>
    %96 = vector.multi_reduction <add>, %95, %cst_34 [1, 2] : vector<1x8x1xf32> to vector<1xf32>
    %97 = vector.shape_cast %96 : vector<1xf32> to vector<1x1x1xf32>
    %98 = vector.extract %97[0, 0, 0] : f32 from vector<1x1x1xf32>
    %cst_35 = arith.constant 9.765625E-4 : f32
    %99 = arith.mulf %93, %cst_35 : f32
    %100 = arith.subf %84, %93 : f32
    %cst_36 = arith.constant 9.765625E-4 : f32
    %101 = arith.mulf %100, %cst_36 : f32
    %cst_37 = arith.constant 9.765625E-4 : f32
    %102 = arith.mulf %98, %cst_37 : f32
    %103 = arith.mulf %99, %99 : f32
    %104 = arith.subf %102, %103 : f32
    %105 = arith.subf %88, %98 : f32
    %cst_38 = arith.constant 9.765625E-4 : f32
    %106 = arith.mulf %105, %cst_38 : f32
    %107 = arith.mulf %101, %101 : f32
    %108 = arith.subf %106, %107 : f32
    %109 = vector.broadcast %99 : f32 to vector<8x1xf32>
    %110 = vector.broadcast %101 : f32 to vector<8x1xf32>
    %111 = arith.select %13, %109, %110 : vector<8x1xi1>, vector<8x1xf32>
    %cst_39 = arith.constant 9.99999974E-6 : f32
    %112 = arith.addf %104, %cst_39 : f32
    %113 = math.rsqrt %112 : f32
    %cst_40 = arith.constant 9.99999974E-6 : f32
    %114 = arith.addf %108, %cst_40 : f32
    %115 = math.rsqrt %114 : f32
    %116 = vector.broadcast %113 : f32 to vector<8x1xf32>
    %117 = vector.broadcast %115 : f32 to vector<8x1xf32>
    %118 = arith.select %13, %116, %117 : vector<8x1xi1>, vector<8x1xf32>
    %c0_41 = arith.constant 0 : index
    %c0_42 = arith.constant 0 : index
    %119 = vector.load %arg3[%c0_41, %c0_42] : memref<8x1xf32, #tpu.memory_space<vmem>>, vector<8x1xf32>
    %120 = arith.mulf %118, %119 : vector<8x1xf32>
    %121 = vector.broadcast %111 : vector<8x1xf32> to vector<8x256xf32>
    %122 = arith.subf %75, %121 : vector<8x256xf32>
    %123 = vector.broadcast %120 : vector<8x1xf32> to vector<8x256xf32>
    %124 = arith.mulf %122, %123 : vector<8x256xf32>
    %c0_43 = arith.constant 0 : index
    %c0_44 = arith.constant 0 : index
    %125 = vector.load %arg4[%c0_43, %c0_44] : memref<8x1xf32, #tpu.memory_space<vmem>>, vector<8x1xf32>
    %126 = vector.broadcast %125 : vector<8x1xf32> to vector<8x256xf32>
    %127 = arith.addf %124, %126 : vector<8x256xf32>
    %128 = arith.negf %127 : vector<8x256xf32>
    %129 = math.exp %128 : vector<8x256xf32>
    %cst_45 = arith.constant 1.000000e+00 : f32
    %130 = vector.broadcast %cst_45 : f32 to vector<8x256xf32>
    %131 = arith.addf %130, %129 : vector<8x256xf32>
    %132 = arith.divf %130, %131 : vector<8x256xf32>
    %133 = arith.mulf %127, %132 : vector<8x256xf32>
    %c0_46 = arith.constant 0 : index
    %c0_47 = arith.constant 0 : index
    %134 = vector.load %arg5[%c0_46, %c0_47] : memref<8x256xf32, #tpu.memory_space<vmem>>, vector<8x256xf32>
    tpu.vector_store %arg5[%c0_46, %c0_47], %133 {strides = array<i32>} : memref<8x256xf32, #tpu.memory_space<vmem>>, vector<8x256xf32>,
    return
  }
}

</mosaic_0001>

<bundles_post_ra>
// kernel: tile.13
= control target key start
LH: loop header
LB: loop body
LE: loop exit
PB: predicated region body
PF: predicated region fallthrough
CT: control target
= control target key end

     0   :  { %s22_s0 = inlined_call_operand.vmem [shape: f32[4], index: 0, kind: input, shape index: {}]   ;;  %s23_s1 = inlined_call_operand.vmem [shape: f32[2,4], index: 1, kind: output, shape index: {}]  }
   0x1   :  { %v4_v0 = vld [vmem:[%s22_s0] ss:$0 sm:$0xff] }
   0x2   :  { %5 = vst [vmem:[%s23_s1] sm:$0x3] %v4_v0 }

// kernel: simple_mock_model_forward.1
= control target key start
LH: loop header
LB: loop body
LE: loop exit
PB: predicated region body
PF: predicated region fallthrough
CT: control target
= control target key end

     0   :  { %s498_s22 = smov 15   ;;  %s499_s23 = smov 17   ;;  %v506_v3 = vmov 0.0   ;;  %v507_v4 = vmov 0   ;;  %v20_v6 = vlaneseq  ;;  %vm508_vm9 = vmmov 1   ;;  %s720_s0 = inlined_call_operand.vmem [shape: f32[8,256], index: 0, kind: input, shape index: {}]   ;;  %s721_s2 = inlined_call_operand.vmem [shape: f32[8,1], index: 2, kind: input, shape index: {}]   ;;  %s722_s1 = inlined_call_operand.vmem [shape: f32[8,72], index: 1, kind: input, shape index: {}]   ;;  %s723_s4 = inlined_call_operand.vmem [shape: f32[8,1], index: 4, kind: input, shape index: {}]   ;;  %s724_s3 = inlined_call_operand.vmem [shape: f32[8,1], index: 3, kind: input, shape index: {}]   ;;  %s725_s5 = inlined_call_operand.vmem [shape: f32[8,256], index: 5, kind: output, shape index: {}]  }
   0x1   :  { %v542_v0 = vld [vmem:[%s720_s0] sm:$0xff]  ;;  %v547_v1 = vld [vmem:[%s720_s0 + $0x8] sm:$0xff]  ;;  %s500_s24 = smov 1   ;;  %s501_s25 = smov 16   ;;  %263 = vmatprep.mubr.f32.mxu0 %v506_v3  ;;  %484 = vset.pattern.permute.xlu1 %v507_v4 }
   0x2   :  { %v459_v2 = vpack.i.bf16 %v547_v1, %v542_v0  ;;  %s502_s26 = smov 127   ;;  %s503_s27 = smov 113   ;;  %v189_v5 = vld [vmem:[%s721_s2] sm:$0xff]  ;;  %485 = vset.pattern.permute.xlu0 %v507_v4  ;;  %v558_v7 = vand.u32 127, %v20_v6 }
   0x3   :  { %s504_s28 = smov 112   ;;  %s505_s29 = smov 111  }
   0x4   :  { %460 = vrot.lane.b32.xlu1 %v459_v2, %s498_s22  ;;  %450 = vrot.lane.b32.xlu0 %v459_v2, %s499_s23  ;;  %v561_v8 = vadd.s32 128, %v558_v7  ;;  %v23_v9 = vand.u32 15, %v558_v7  ;;  %vm29_vm1 = vcmp.ge.s32.totalorder %v558_v7, 16  ;;  %vm77_vm2 = vcmp.lt.s32.totalorder %v558_v7, 15 }
   0x5   :  { %vm45_vm4 = vcmp.lt.s32.totalorder %v558_v7, 17  ;;  %vm94_vm5 = vcmp.lt.s32.totalorder %v558_v7, 1  ;;  %vm62_vm6 = vcmp.lt.s32.totalorder %v558_v7, 16  ;;  %vm111_vm13 = vcmp.lt.s32.totalorder %v558_v7, 127 }
   0x6   :  { %v24_v10 = vand.u32 15, %v561_v8  ;;  %vm565_vm0 = vcmp.ge.s32.totalorder %v23_v9, 1  ;;  %vm601_vm11 = vcmp.le.s32.totalorder %v23_v9, 14 }
   0x7   :  { %vm582_vm7 = vmand %vm29_vm1, %vm565_vm0 }
   0x8   :  { %465 = vrot.lane.b32.xlu1 %v459_v2, %s500_s24  ;;  %455 = vrot.lane.b32.xlu0 %v459_v2, %s501_s25  ;;  %vm571_vm3 = vcmp.ge.s32.totalorder %v24_v10, 1  ;;  %vm586_vm8 = vcmp.le.s32.totalorder %v24_v10, 14  ;;  %vm613_vm12 = vmpackc.low %vm29_vm1, %vm582_vm7 }
   0x9   :  { %vm597_vm10 = vmpackc.low %vm508_vm9, %vm571_vm3 }
   0xa   :  { %vm409_vm14 = vmpackc.low %vm571_vm3, %vm586_vm8 }
   0xb   :  { %vm626_vm15 = vmand %vm29_vm1, %vm601_vm11  ;;  %vm32_vm1 = vcmp.lt.s32.totalorder %v561_v8, 240 }
   0xc   :  { %470 = vrot.lane.b32.xlu0 %v459_v2, %s502_s26  ;;  %475 = vrot.lane.b32.xlu1 %v459_v2, %s503_s27  ;;  %vm130_vm7 = vmand %vm32_vm1, %vm571_vm3  ;;  %vm158_vm3 = vcmp.lt.s32.totalorder %v558_v7, 111 }
  0x10   :  { %480 = vrot.lane.b32.xlu0 %v459_v2, %s504_s28  ;;  %154 = vrot.lane.b32.xlu1 %v542_v0, %s505_s29  ;;  %v38_v2 = vld [vmem:[%s722_s1] sm:$0xff] }
  0x14   :  { %156 = vrot.lane.b32.xlu0 %v547_v1, %s505_s29  ;;  %192 = vperm.xlu1 %484, %v189_v5  }
  0x76   :  { %v461_v11 = vpop.permute.xlu1 %460  ;;  %v451_v12 = vpop.permute.xlu0 %450 }
  0x77   :  { %v463_v14 = vunpack.i.h.bf16 %v461_v11  ;;  %v462_v15 = vunpack.i.l.bf16 %v461_v11  ;;  %v453_v16 = vunpack.i.h.bf16 %v451_v12  ;;  %v452_v17 = vunpack.i.l.bf16 %v451_v12 }
  0x79   :  { %v78_v27 = vsel %vm77_vm2, %v462_v15, %v463_v14  ;;  %v46_v28 = vsel %vm45_vm4, %v452_v17, %v453_v16  ;;  %v47_v33 = vsel %vm45_vm4, %v453_v16, %v452_v17  ;;  %v79_v45 = vsel %vm77_vm2, %v463_v14, %v462_v15  ;;  %vm412_vm2 = vmpackc.low %vm565_vm0, %vm626_vm15 }
  0x7a   :  { %v466_v19 = vpop.permute.xlu1 %465  ;;  %v456_v20 = vpop.permute.xlu0 %455  ;;  %vm126_vm4 = vcmp.lt.s32.totalorder %v558_v7, 113  ;;  %vm195_vm15 = vcmask 588800   ;;  %v696_v14 = vshrl.u32 %v20_v6, 7 }
  0x7b   :  { %v468_v23 = vunpack.i.h.bf16 %v466_v19  ;;  %v467_v24 = vunpack.i.l.bf16 %v466_v19  ;;  %v458_v25 = vunpack.i.h.bf16 %v456_v20  ;;  %v457_v26 = vunpack.i.l.bf16 %v456_v20 }
  0x7d   :  { %v95_v31 = vsel %vm94_vm5, %v467_v24, %v468_v23  ;;  %v63_v32 = vsel %vm62_vm6, %v457_v26, %v458_v25  ;;  %v64_v34 = vsel %vm62_vm6, %v458_v25, %v457_v26  ;;  %v96_v46 = vsel %vm94_vm5, %v468_v23, %v467_v24  ;;  %vm415_vm6 = vmpackc.low %vm586_vm8, %vm508_vm9 }
  0x7e   :  { %v402_v36 = vpack.c.bf16 %v63_v32, %v46_v28  ;;  %v405_v37 = vpack.c.bf16 %v64_v34, %v47_v33  ;;  %v471_v38 = vpop.permute.xlu0 %470  ;;  %v476_v39 = vpop.permute.xlu1 %475  ;;  %v408_v47 = vpack.c.bf16 %v95_v31, %v78_v27  ;;  %vm143_vm5 = vcmp.lt.s32.totalorder %v558_v7, 112 }
  0x7f   :  { %v473_v40 = vunpack.i.h.bf16 %v471_v38  ;;  %v472_v41 = vunpack.i.l.bf16 %v471_v38  ;;  %v478_v43 = vunpack.i.h.bf16 %v476_v39  ;;  %v477_v44 = vunpack.i.l.bf16 %v476_v39 }
  0x80   :  { %404 = vmatprep.subr.msk.bf16.mxu0 %vm597_vm10, %v402_v36  ;;  %v411_v52 = vpack.c.bf16 %v96_v46, %v79_v45  ;;  %vm418_vm10 = vmpackc.low %vm601_vm11, %vm508_vm9 }
  0x81   :  { %407 = vmatpush1.bf16.msk.msra.mxu0 %vm613_vm12, %v405_v37  ;;  %v113_v48 = vsel %vm111_vm13, %v473_v40, %v472_v41  ;;  %v112_v49 = vsel %vm111_vm13, %v472_v41, %v473_v40  ;;  %v128_v53 = vsel %vm126_vm4, %v478_v43, %v477_v44  ;;  %v127_v58 = vsel %vm126_vm4, %v477_v44, %v478_v43  ;;  %vm421_vm12 = vmpackc.low %vm32_vm1, %vm130_vm7 }
  0x82   :  { %v414_v50 = vpack.c.bf16 %v113_v48, %v547_v1  ;;  %410 = vmatprep.subr.msk.bf16.mxu0 %vm409_vm14, %v408_v47  ;;  %v481_v51 = vpop.permute.xlu0 %480  ;;  %v417_v56 = vpack.c.bf16 %v112_v49, %v542_v0  ;;  %v155_v61 = vpop.permute.xlu1 %154  ;;  %vm424_vm13 = vmpackc.low %vm508_vm9, %vm565_vm0  ;;  %vm35_vm0 = vcmp.lt.s32.totalorder %v696_v14, 4 }
  0x83   :  { %v483_v54 = vunpack.i.h.bf16 %v481_v51  ;;  %v482_v55 = vunpack.i.l.bf16 %v481_v51  ;;  %vm162_vm14 = vmand %vm32_vm1, %vm586_vm8  ;;  %v384_v15 = vsel %vm35_vm0, 1.0, %v506_v3  ;;  %vm278_vm8 = vcmask 7168  }
  0x85   :  { %413 = vmatpush1.bf16.msk.msra.mxu0 %vm412_vm2, %v411_v52  ;;  %v145_v57 = vsel %vm143_vm5, %v483_v54, %v482_v55  ;;  %v144_v59 = vsel %vm143_vm5, %v482_v55, %v483_v54 }
  0x86   :  { %v420_v60 = vpack.c.bf16 %v145_v57, %v128_v53  ;;  %416 = vmatprep.subr.msk.bf16.mxu0 %vm415_vm6, %v414_v50  ;;  %v157_v62 = vpop.permute.xlu0 %156  ;;  %v423_v63 = vpack.c.bf16 %v144_v59, %v127_v58  ;;  %v356_v50 = vld [vmem:[%s723_s4] sm:$0xff] }
  0x87   :  { %v160_v0 = vsel %vm158_vm3, %v157_v62, %v155_v61  ;;  %v159_v1 = vsel %vm158_vm3, %v155_v61, %v157_v62  ;;  %v345_v58 = vld [vmem:[%s724_s3] sm:$0xff] }
  0x89   :  { %419 = vmatpush1.bf16.msk.msra.mxu0 %vm418_vm10, %v417_v56 }
  0x8a   :  { %422 = vmatprep.subr.msk.bf16.mxu0 %vm421_vm12, %v420_v60 }
  0x8d   :  { %425 = vmatpush1.bf16.msk.msra.mxu0 %vm424_vm13, %v423_v63 }
  0x8e   :  { %400 = vmatprep.subr.msk.mxu0 %vm162_vm14, %v160_v0 }
  0x91   :  { %401 = vmatpush1.msk.msra.mxu0 %vm601_vm11, %v159_v1 }
  0x92   :  { %385 = vmatmul.mubr.msk.f32.vlgmr.msra.gmra.mrb[0].mxu0 %vm195_vm15, %v38_v2 }
  0x93   :  { %v193_v4 = vpop.permute.xlu1 %192 }
 0x165   :  { %v265_v5 = vpop.f32.mrb[0].mxu0 }
 0x166   :  { %v685_v7 = vadd.f32 %v265_v5, %v193_v4  ;;  %v267_v9 = vpop.f32.mrb[1].mxu0 }
 0x167   :  { %v687_v10 = vadd.f32 %v267_v9, %v193_v4 }
 0x168   :  { %v273_v8 = vmul.f32 %v685_v7, %v685_v7 }
 0x169   :  { %v270_v11 = vadd.f32 %v687_v10, %v685_v7  ;;  %v274_v12 = vmul.f32 %v687_v10, %v687_v10 }
 0x16b   :  { %271 = vadd.xlane.f32.xlu0 %v270_v11  ;;  %v275_v13 = vadd.f32 %v274_v12, %v273_v8 }
 0x16d   :  { %276 = vadd.xlane.f32.xlu1 %v275_v13 }
 0x1f8   :  { %v272_v16 = vpop.xlane.xlu0 %271 }
 0x1f9   :  { %v299_v17 = vmul.f32 %v384_v15, %v272_v16  ;;  %v279_v18 = vsel %vm278_vm8, %v272_v16, 0.0 }
 0x1fa   :  { %v277_v19 = vpop.xlane.xlu1 %276  ;;  %280 = vadd.xlane.f32.xlu0 %v279_v18 }
 0x1fb   :  { %v300_v20 = vsel %vm278_vm8, %v299_v17, 0.0  ;;  %v310_v21 = vmul.f32 %v384_v15, %v277_v19  ;;  %v289_v22 = vsel %vm278_vm8, %v277_v19, 0.0 }
 0x1fc   :  { %301 = vadd.xlane.f32.xlu1 %v300_v20 }
 0x1fd   :  { %v311_v23 = vsel %vm278_vm8, %v310_v21, 0.0 }
 0x1fe   :  { %290 = vadd.xlane.f32.xlu0 %v289_v22 }
 0x202   :  { %312 = vadd.xlane.f32.xlu0 %v311_v23 }
 0x218   :  { %359 = vperm.xlu0 %485, %v356_v50  }
 0x287   :  { %v281_v6 = vpop.xlane.xlu0 %280 }
 0x288   :  { %v282_v24 = vrot.slane %v281_v6, 4 }
 0x289   :  { %v302_v25 = vpop.xlane.xlu1 %301 }
 0x28a   :  { %v283_v26 = vadd.f32 %v282_v24, %v281_v6  ;;  %v303_v27 = vrot.slane %v302_v25, 4 }
 0x28b   :  { %v291_v28 = vpop.xlane.xlu0 %290 }
 0x28c   :  { %v284_v3 = vrot.slane %v283_v26, 2  ;;  %v304_v29 = vadd.f32 %v303_v27, %v302_v25  ;;  %v292_v30 = vrot.slane %v291_v28, 4 }
 0x28e   :  { %v305_v31 = vrot.slane %v304_v29, 2  ;;  %v293_v32 = vadd.f32 %v292_v30, %v291_v28  ;;  %v285_v33 = vadd.f32 %v284_v3, %v283_v26 }
 0x28f   :  { %v313_v34 = vpop.xlane.xlu0 %312 }
 0x290   :  { %v294_v35 = vrot.slane %v293_v32, 2  ;;  %v314_v36 = vrot.slane %v313_v34, 4  ;;  %v286_v37 = vrot.slane %v285_v33, 1  ;;  %v306_v38 = vadd.f32 %v305_v31, %v304_v29 }
 0x292   :  { %v315_v39 = vadd.f32 %v314_v36, %v313_v34  ;;  %v287_v40 = vadd.f32 %v286_v37, %v285_v33  ;;  %v295_v41 = vadd.f32 %v294_v35, %v293_v32  ;;  %v307_v42 = vrot.slane %v306_v38, 1 }
 0x294   :  { %v316_v43 = vrot.slane %v315_v39, 2  ;;  %426 = vpush %v287_v40  ;;  %v296_v44 = vrot.slane %v295_v41, 1  ;;  %v308_v47 = vadd.f32 %v307_v42, %v306_v38 }
 0x296   :  { %v297_v45 = vadd.f32 %v296_v44, %v295_v41  ;;  %v317_v46 = vadd.f32 %v316_v43, %v315_v39 }
 0x297   :  { %v360_v2 = vpop.permute.xlu0 %359 }
 0x298   :  { %428 = vpush %v297_v45  ;;  %v318_v48 = vrot.slane %v317_v46, 1 }
 0x299   :  { %430 = vpush %v308_v47 }
 0x29a   :  { %v319_v49 = vadd.f32 %v318_v48, %v317_v46 }
 0x29c   :  { %432 = vpush %v319_v49 }
 0x2c5   :  { %s427_s8 = spop %426 }
 0x2c9   :  { %s429_s9 = spop %428 }
 0x2ca   :  { %s431_s10 = spop %430 }
 0x2cb   :  { %s321_s11 = smul.f32 0.0009765625, %s431_s10  ;;  %s322_s12 = ssub.f32 %s427_s8, %s431_s10 }
 0x2cd   :  { %s323_s13 = smul.f32 0.0009765625, %s322_s12  ;;  %s433_s14 = spop %432  ;;  %v331_v51 = vstv %s321_s11 }
 0x2ce   :  { %s325_s15 = smul.f32 %s321_s11, %s321_s11  ;;  %s327_s16 = ssub.f32 %s429_s9, %s433_s14 }
 0x2cf   :  { %s329_s17 = smul.f32 %s323_s13, %s323_s13  ;;  %v332_v52 = vstv %s323_s13 }
 0x2d0   :  { %s324_s18 = smul.f32 0.0009765625, %s433_s14  ;;  %v333_v53 = vsel %vm35_vm0, %v331_v51, %v332_v52 }
 0x2d1   :  { %s328_s19 = smul.f32 0.0009765625, %s327_s16  ;;  %v347_v63 = vsub.f32 %v685_v7, %v333_v53  ;;  %v348_v0 = vsub.f32 %v687_v10, %v333_v53 }
 0x2d2   :  { %s326_s4 = ssub.f32 %s324_s18, %s325_s15 }
 0x2d3   :  { %s330_s20 = ssub.f32 %s328_s19, %s329_s17 }
 0x2d4   :  { %s334_s21 = sadd.f32 1e-05, %s326_s4 }
 0x2d5   :  { %s338_s22 = sadd.f32 1e-05, %s330_s20 }
 0x2d6   :  { %v335_v54 = vstv %s334_s21 }
 0x2d7   :  { %486 = vrsqrt.f32 %v335_v54  ;;  %v339_v55 = vstv %s338_s22 }
 0x2d8   :  { %488 = vrsqrt.f32 %v339_v55 }
 0x2e1   :  { %v487_v56 = vpop.eup %486 }
 0x2e2   :  { %v489_v57 = vpop.eup %488  ;;  %434 = vpush %v487_v56 }
 0x2e3   :  { %436 = vpush %v489_v57 }
 0x313   :  { %s435_s23 = spop %434 }
 0x314   :  { %s437_s24 = spop %436  ;;  %v342_v59 = vstv %s435_s23 }
 0x315   :  { %v343_v60 = vstv %s437_s24 }
 0x316   :  { %v344_v61 = vsel %vm35_vm0, %v342_v59, %v343_v60 }
 0x317   :  { %v346_v62 = vmul.f32 %v345_v58, %v344_v61 }
 0x319   :  { %351 = vperm.xlu1 %484, %v346_v62  }
 0x398   :  { %v352_v1 = vpop.permute.xlu1 %351 }
 0x399   :  { %v354_v4 = vmul.f32 %v352_v1, %v347_v63  ;;  %v355_v5 = vmul.f32 %v352_v1, %v348_v0 }
 0x39b   :  { %v362_v9 = vadd.f32 %v360_v2, %v354_v4  ;;  %v363_v8 = vadd.f32 %v360_v2, %v355_v5 }
 0x39d   :  { %v386_v11 = vmul.f32 -1.442695, %v362_v9  ;;  %v387_v12 = vmul.f32 -1.442695, %v363_v8 }
 0x39f   :  { %490 = vpow2.f32 %v386_v11 }
 0x3a0   :  { %492 = vpow2.f32 %v387_v12 }
 0x3a9   :  { %v491_v13 = vpop.eup %490 }
 0x3aa   :  { %v493_v15 = vpop.eup %492  ;;  %v370_v14 = vadd.f32 1.0, %v491_v13 }
 0x3ab   :  { %v371_v16 = vadd.f32 1.0, %v493_v15 }
 0x3ac   :  { %494 = vrcp.f32 %v370_v14 }
 0x3ad   :  { %496 = vrcp.f32 %v371_v16 }
 0x3b6   :  { %v495_v17 = vpop.eup %494 }
 0x3b7   :  { %v497_v7 = vpop.eup %496  ;;  %v376_v18 = vmul.f32 %v495_v17, %v362_v9 }
 0x3b8   :  { %v377_v10 = vmul.f32 %v497_v7, %v363_v8 }
 0x3b9   :  { %378 = vst [vmem:[%s725_s5] sm:$0xff] %v376_v18 }
 0x3ba   :  { %379 = vst [vmem:[%s725_s5 + $0x8] sm:$0xff] %v377_v10 }

</bundles_post_ra>
